<compile_context>
chip_gen: v7x
topology: tpu7x:2x2x1
jax: 0.10.0
libtpu: 0.0.40
codegen_flags: <defaults>
</compile_context>

<pallas_src>
import jax
import jax.numpy as jnp
from jax.experimental import pallas as pl
from jax.experimental.pallas import tpu as pltpu
from jax.scipy.special import gammaln


# --------------------------------------------------------------------------
# Pallas kernel: trunk MLP + all four heads fused into a single matmul chain.
# --------------------------------------------------------------------------
def _policy_kernel(x_ref, w1_ref, b1_ref, w2_ref, b2_ref, wh_ref, bh_ref,
                   out_ref):
    # x is bf16 [TB, SP]; weights are bf16; accumulate in f32 on the MXU.
    x = x_ref[...]
    h1 = jnp.tanh(
        jnp.dot(x, w1_ref[...], preferred_element_type=jnp.float32)
        + b1_ref[...])
    h2 = jnp.tanh(
        jnp.dot(h1.astype(jnp.bfloat16), w2_ref[...],
                preferred_element_type=jnp.float32)
        + b2_ref[...])
    z = (jnp.dot(h2.astype(jnp.bfloat16), wh_ref[...],
                 preferred_element_type=jnp.float32)
         + bh_ref[...])
    # Softplus (torch.nn.Softplus, beta=1): numerically stable log(1 + exp(z)).
    out_ref[...] = jnp.maximum(z, 0.0) + jnp.log1p(jnp.exp(-jnp.abs(z)))


def _round_up(x, m):
    return ((x + m - 1) // m) * m


def policy_heads_pallas(state, params, state_dim, d_total):
    """Fused trunk+heads. Returns [B, d_total] positive (softplus) params."""
    B = state.shape[0]
    SP, HP = params["W1"].shape
    DP = params["Wh"].shape[1]

    # Batch tile: multiple of 8, capped at 512 (vreg / VMEM pressure stays low:
    # 512x128 f32 acc = 256 KiB).
    TB = min(512, _round_up(B, 8))
    Bp = _round_up(B, TB)
    grid = (Bp // TB,)

    # Pad batch + lane dims; bf16 halves input DMA bytes.
    x = jnp.pad(state.astype(jnp.bfloat16),
                ((0, Bp - B), (0, SP - state_dim)))

    args = (x, params["W1"], params["b1"], params["W2"], params["b2"],
            params["Wh"], params["bh"])

    flops = 2 * Bp * (SP * HP + HP * HP + HP * DP)
    transcendentals = Bp * (2 * HP + 2 * DP)
    bytes_accessed = (x.size * 2
                      + sum(int(params[k].size) * params[k].dtype.itemsize
                            for k in ("W1", "b1", "W2", "b2", "Wh", "bh"))
                      + Bp * DP * 4)

    out = pl.pallas_call(
        _policy_kernel,
        out_shape=jax.ShapeDtypeStruct((Bp, DP), jnp.float32),
        grid=grid,
        in_specs=[
            pl.BlockSpec((TB, SP), lambda i: (i, 0)),   # state tile (pipelined)
            pl.BlockSpec((SP, HP), lambda i: (0, 0)),   # W1 (VMEM-resident)
            pl.BlockSpec((1, HP), lambda i: (0, 0)),    # b1
            pl.BlockSpec((HP, HP), lambda i: (0, 0)),   # W2
            pl.BlockSpec((1, HP), lambda i: (0, 0)),    # b2
            pl.BlockSpec((HP, DP), lambda i: (0, 0)),   # Wh (concat heads)
            pl.BlockSpec((1, DP), lambda i: (0, 0)),    # bh
        ],
        out_specs=pl.BlockSpec((TB, DP), lambda i: (i, 0)),
        compiler_params=pltpu.CompilerParams(
            dimension_semantics=("parallel",),
            vmem_limit_bytes=64 << 20,
        ),
        cost_estimate=pl.CostEstimate(
            flops=flops,
            transcendentals=transcendentals,
            bytes_accessed=bytes_accessed,
        ),
    )(*args)

    # Strip batch/lane padding before the head splits.
    return out[:B, :d_total]


# --------------------------------------------------------------------------
# Plain-JAX glue: parameter init, distribution sampling, log-probs.
# --------------------------------------------------------------------------
def init_params(key, state_dim, hidden_dim, n_branches, n_firms, limit=False):
    d_buy = n_firms * n_branches + 1
    d_sale = 2 * n_branches
    d_use = (3 if limit else 2) * n_branches
    d_prices = 2 * n_branches
    d_total = d_buy + d_sale + d_use + d_prices

    # Lane-padded (128) sizes for the kernel; padding is zeros.
    SP = _round_up(state_dim, 128)
    HP = _round_up(hidden_dim, 128)
    DP = _round_up(d_total, 128)

    k1, k2, k3, k4, k5, k6 = jax.random.split(key, 6)
    orth1 = jax.nn.initializers.orthogonal(scale=1.0)
    orth001 = jax.nn.initializers.orthogonal(scale=0.01)

    W1 = orth1(k1, (state_dim, hidden_dim), jnp.float32)
    W2 = orth1(k2, (hidden_dim, hidden_dim), jnp.float32)
    W_buy = orth001(k3, (hidden_dim, d_buy), jnp.float32)
    W_sale = orth001(k4, (hidden_dim, d_sale), jnp.float32)
    W_use = orth001(k5, (hidden_dim, d_use), jnp.float32)
    W_prices = orth001(k6, (hidden_dim, d_prices), jnp.float32)
    Wh = jnp.concatenate([W_buy, W_sale, W_use, W_prices], axis=1)

    def pad2(w, r, c):
        return jnp.pad(w, ((0, r - w.shape[0]), (0, c - w.shape[1])))

    params = {
        # bf16 matmul operands (f32 accumulate in-kernel); biases stay f32
        # and are zero (matches orthogonal_init zeroing biases).
        "W1": pad2(W1, SP, HP).astype(jnp.bfloat16),
        "b1": jnp.zeros((1, HP), jnp.float32),
        "W2": pad2(W2, HP, HP).astype(jnp.bfloat16),
        "b2": jnp.zeros((1, HP), jnp.float32),
        "Wh": pad2(Wh, HP, DP).astype(jnp.bfloat16),
        "bh": jnp.zeros((1, DP), jnp.float32),
    }
    return params, (d_buy, d_sale, d_use, d_prices)


_EPS = 1e-8


def _dirichlet_log_prob(alpha, x):
    x = jnp.clip(x, _EPS, 1.0 - _EPS)
    return (jnp.sum((alpha - 1.0) * jnp.log(x), axis=-1)
            + gammaln(jnp.sum(alpha, axis=-1))
            - jnp.sum(gammaln(alpha), axis=-1))


def _beta_log_prob(a, b, x):
    x = jnp.clip(x, _EPS, 1.0 - _EPS)
    return ((a - 1.0) * jnp.log(x) + (b - 1.0) * jnp.log1p(-x)
            + gammaln(a + b) - gammaln(a) - gammaln(b))


def _heads_reference(state, params, state_dim, d_total):
    """Pure-JAX reference of the fused kernel (same bf16 weight quantization)."""
    SP = params["W1"].shape[0]
    x = jnp.pad(state, ((0, 0), (0, SP - state_dim))).astype(jnp.float32)
    h1 = jnp.tanh(x @ params["W1"].astype(jnp.float32) + params["b1"])
    h2 = jnp.tanh(h1 @ params["W2"].astype(jnp.float32) + params["b2"])
    z = h2 @ params["Wh"].astype(jnp.float32) + params["bh"]
    return jax.nn.softplus(z)[:, :d_total]


def beta_policy_forward(params, head_dims, state, key, state_dim, n_branches,
                        limit=False):
    B = state.shape[0]
    d_buy, d_sale, d_use, d_prices = head_dims
    d_total = d_buy + d_sale + d_use + d_prices

    head_params = policy_heads_pallas(state, params, state_dim, d_total)

    o0 = d_buy
    o1 = o0 + d_sale
    o2 = o1 + d_use
    buy_params = head_params[:, :o0]                                  # [B, d_buy]
    sale_params = head_params[:, o0:o1].reshape(B, n_branches, 2)     # [B, nb, 2]
    use_params = head_params[:, o1:o2].reshape(B, n_branches, 2 + int(limit))
    prices_params = head_params[:, o2:].reshape(B, n_branches, 2)     # [B, nb, 2]

    kb, ks, ku, kp = jax.random.split(key, 4)
    percent_to_buy = jax.random.dirichlet(kb, buy_params)             # [B, d_buy]
    percent_to_sale = jax.random.beta(ks, sale_params[..., 0],
                                      sale_params[..., 1])            # [B, nb]
    percent_to_use_full = jax.random.dirichlet(ku, use_params)        # [B, nb, k]
    percent_price_change = jax.random.beta(kp, prices_params[..., 0],
                                           prices_params[..., 1])     # [B, nb]

    buy_log_prob = _dirichlet_log_prob(buy_params, percent_to_buy)    # [B]
    use_log_prob = _dirichlet_log_prob(use_params, percent_to_use_full)  # [B, nb]

    # batched case (buy_log_prob.dim() != 0): drop last simplex column, flatten.
    percent_to_use = percent_to_use_full[:, :, :-1].reshape(B, -1)

    actions = (percent_to_buy, percent_to_sale, percent_to_use,
               percent_price_change)
    log_probs = (
        buy_log_prob[..., None],                                      # [B, 1]
        _beta_log_prob(sale_params[..., 0], sale_params[..., 1],
                       percent_to_sale),                              # [B, nb]
        use_log_prob,                                                 # [B, nb]
        _beta_log_prob(prices_params[..., 0], prices_params[..., 1],
                       percent_price_change),                         # [B, nb]
    )
    return actions, log_probs


if __name__ == "__main__":
    # Small shapes consistent with the module's forward ([batch, features]).
    batch, state_dim, hidden_dim = 8, 32, 64
    n_branches, n_firms, limit = 4, 3, False

    root = jax.random.PRNGKey(0)
    k_param, k_state, k_sample = jax.random.split(root, 3)

    params, head_dims = init_params(k_param, state_dim, hidden_dim,
                                    n_branches, n_firms, limit)
    state = jax.random.normal(k_state, (batch, state_dim), jnp.float32)

    d_total = sum(head_dims)

    # Kernel vs pure-JAX reference (bf16 matmul inputs -> loose tolerance).
    heads_kernel = policy_heads_pallas(state, params, state_dim, d_total)
    heads_ref = _heads_reference(state, params, state_dim, d_total)
    jax.block_until_ready((heads_kernel, heads_ref))
    assert heads_kernel.shape == (batch, d_total)
    assert bool(jnp.all(jnp.isfinite(heads_kernel)))
    assert bool(jnp.all(heads_kernel > 0.0))          # softplus output
    assert bool(jnp.max(jnp.abs(heads_kernel - heads_ref)) < 2e-2)

    actions, log_probs = beta_policy_forward(params, head_dims, state,
                                             k_sample, state_dim, n_branches,
                                             limit)
    jax.block_until_ready((actions, log_probs))

    # Sanity checks on shapes (match PyTorch semantics).
    assert actions[0].shape == (batch, n_firms * n_branches + 1)
    assert actions[1].shape == (batch, n_branches)
    assert actions[2].shape == (batch, n_branches)   # (k-1)*nb with k=2
    assert actions[3].shape == (batch, n_branches)
    assert log_probs[0].shape == (batch, 1)
    assert log_probs[1].shape == (batch, n_branches)
    assert log_probs[2].shape == (batch, n_branches)
    assert log_probs[3].shape == (batch, n_branches)
    assert bool(jnp.all(jnp.isfinite(jnp.concatenate(
        [lp.ravel() for lp in log_probs]))))

    print("KERNEL_OK")
</pallas_src>

<mosaic_0001>
module attributes {stable_mosaic.version = 11 : i64} {
  func.func @_policy_kernel(%arg0: i32, %arg1: memref<8x128xbf16, #tpu.memory_space<vmem>>, %arg2: memref<128x128xbf16, #tpu.memory_space<vmem>>, %arg3: memref<1x128xf32, #tpu.memory_space<vmem>>, %arg4: memref<128x128xbf16, #tpu.memory_space<vmem>>, %arg5: memref<1x128xf32, #tpu.memory_space<vmem>>, %arg6: memref<128x128xbf16, #tpu.memory_space<vmem>>, %arg7: memref<1x128xf32, #tpu.memory_space<vmem>>, %arg8: memref<8x128xf32, #tpu.memory_space<vmem>>) attributes {dimension_semantics = [#tpu.dimension_semantics<parallel>], iteration_bounds = array<i64: 1>, scalar_prefetch = 0 : i64, scratch_operands = 0 : i64, tpu.core_type = #tpu.core_type<tc>, window_params = [{transform_indices = @transform_0, window_bounds = array<i64: 8, 128>}, {pipeline_mode = #tpu.pipeline_mode<synchronous>, transform_indices = @transform_1, window_bounds = array<i64: 128, 128>}, {pipeline_mode = #tpu.pipeline_mode<synchronous>, transform_indices = @transform_2, window_bounds = array<i64: 1, 128>}, {pipeline_mode = #tpu.pipeline_mode<synchronous>, transform_indices = @transform_3, window_bounds = array<i64: 128, 128>}, {pipeline_mode = #tpu.pipeline_mode<synchronous>, transform_indices = @transform_4, window_bounds = array<i64: 1, 128>}, {pipeline_mode = #tpu.pipeline_mode<synchronous>, transform_indices = @transform_5, window_bounds = array<i64: 128, 128>}, {pipeline_mode = #tpu.pipeline_mode<synchronous>, transform_indices = @transform_6, window_bounds = array<i64: 1, 128>}, {transform_indices = @transform_7, window_bounds = array<i64: 8, 128>}]} {
    %c0 = arith.constant 0 : index
    %c0_0 = arith.constant 0 : index
    %0 = vector.load %arg1[%c0, %c0_0] : memref<8x128xbf16, #tpu.memory_space<vmem>>, vector<8x128xbf16>
    %c0_1 = arith.constant 0 : index
    %c0_2 = arith.constant 0 : index
    %1 = vector.load %arg2[%c0_1, %c0_2] : memref<128x128xbf16, #tpu.memory_space<vmem>>, vector<128x128xbf16>
    %cst = arith.constant dense<0.000000e+00> : vector<8x128xf32>
    %2 = tpu.matmul %0, %1, %cst {dimension_numbers = #tpu.dot_dimension_numbers<[1], [0], [0], [1], [0, 0, 1, 1], [], []>} : vector<8x128xbf16>, vector<128x128xbf16>, vector<8x128xf32> -> vector<8x128xf32>
    %c0_3 = arith.constant 0 : index
    %c0_4 = arith.constant 0 : index
    %3 = vector.load %arg3[%c0_3, %c0_4] : memref<1x128xf32, #tpu.memory_space<vmem>>, vector<1x128xf32>
    %4 = vector.broadcast %3 : vector<1x128xf32> to vector<8x128xf32>
    %5 = arith.addf %2, %4 : vector<8x128xf32>
    %6 = math.tanh %5 : vector<8x128xf32>
    %7 = arith.truncf %6 : vector<8x128xf32> to vector<8x128xbf16>
    %c0_5 = arith.constant 0 : index
    %c0_6 = arith.constant 0 : index
    %8 = vector.load %arg4[%c0_5, %c0_6] : memref<128x128xbf16, #tpu.memory_space<vmem>>, vector<128x128xbf16>
    %cst_7 = arith.constant dense<0.000000e+00> : vector<8x128xf32>
    %9 = tpu.matmul %7, %8, %cst_7 {dimension_numbers = #tpu.dot_dimension_numbers<[1], [0], [0], [1], [0, 0, 1, 1], [], []>} : vector<8x128xbf16>, vector<128x128xbf16>, vector<8x128xf32> -> vector<8x128xf32>
    %c0_8 = arith.constant 0 : index
    %c0_9 = arith.constant 0 : index
    %10 = vector.load %arg5[%c0_8, %c0_9] : memref<1x128xf32, #tpu.memory_space<vmem>>, vector<1x128xf32>
    %11 = vector.broadcast %10 : vector<1x128xf32> to vector<8x128xf32>
    %12 = arith.addf %9, %11 : vector<8x128xf32>
    %13 = math.tanh %12 : vector<8x128xf32>
    %14 = arith.truncf %13 : vector<8x128xf32> to vector<8x128xbf16>
    %c0_10 = arith.constant 0 : index
    %c0_11 = arith.constant 0 : index
    %15 = vector.load %arg6[%c0_10, %c0_11] : memref<128x128xbf16, #tpu.memory_space<vmem>>, vector<128x128xbf16>
    %cst_12 = arith.constant dense<0.000000e+00> : vector<8x128xf32>
    %16 = tpu.matmul %14, %15, %cst_12 {dimension_numbers = #tpu.dot_dimension_numbers<[1], [0], [0], [1], [0, 0, 1, 1], [], []>} : vector<8x128xbf16>, vector<128x128xbf16>, vector<8x128xf32> -> vector<8x128xf32>
    %c0_13 = arith.constant 0 : index
    %c0_14 = arith.constant 0 : index
    %17 = vector.load %arg7[%c0_13, %c0_14] : memref<1x128xf32, #tpu.memory_space<vmem>>, vector<1x128xf32>
    %18 = vector.broadcast %17 : vector<1x128xf32> to vector<8x128xf32>
    %19 = arith.addf %16, %18 : vector<8x128xf32>
    %cst_15 = arith.constant 0.000000e+00 : f32
    %20 = vector.broadcast %cst_15 : f32 to vector<8x128xf32>
    %21 = arith.maximumf %19, %20 : vector<8x128xf32>
    %22 = math.absf %19 : vector<8x128xf32>
    %cst_16 = arith.constant 0.000000e+00 : f32
    %23 = vector.broadcast %cst_16 : f32 to vector<8x128xf32>
    %24 = arith.subf %23, %22 : vector<8x128xf32>
    %25 = math.exp %24 : vector<8x128xf32>
    %26 = math.log1p %25 : vector<8x128xf32>
    %27 = arith.addf %21, %26 : vector<8x128xf32>
    %c0_17 = arith.constant 0 : index
    %c0_18 = arith.constant 0 : index
    %28 = vector.load %arg8[%c0_17, %c0_18] : memref<8x128xf32, #tpu.memory_space<vmem>>, vector<8x128xf32>
    tpu.vector_store %arg8[%c0_17, %c0_18], %27 {strides = array<i32>} : memref<8x128xf32, #tpu.memory_space<vmem>>, vector<8x128xf32>,
    return
  }
  func.func @transform_0(%arg0: i32) -> (i32, i32) {
    %c0_i32 = arith.constant 0 : i32
    %c0_i32_0 = arith.constant 0 : i32
    return %arg0, %c0_i32 : i32, i32
  }
  func.func @transform_1(%arg0: i32) -> (i32, i32) {
    %c0_i32 = arith.constant 0 : i32
    %c0_i32_0 = arith.constant 0 : i32
    %c0_i32_1 = arith.constant 0 : i32
    return %c0_i32, %c0_i32_0 : i32, i32
  }
  func.func @transform_2(%arg0: i32) -> (i32, i32) {
    %c0_i32 = arith.constant 0 : i32
    %c0_i32_0 = arith.constant 0 : i32
    %c0_i32_1 = arith.constant 0 : i32
    return %c0_i32, %c0_i32_0 : i32, i32
  }
  func.func @transform_3(%arg0: i32) -> (i32, i32) {
    %c0_i32 = arith.constant 0 : i32
    %c0_i32_0 = arith.constant 0 : i32
    %c0_i32_1 = arith.constant 0 : i32
    return %c0_i32, %c0_i32_0 : i32, i32
  }
  func.func @transform_4(%arg0: i32) -> (i32, i32) {
    %c0_i32 = arith.constant 0 : i32
    %c0_i32_0 = arith.constant 0 : i32
    %c0_i32_1 = arith.constant 0 : i32
    return %c0_i32, %c0_i32_0 : i32, i32
  }
  func.func @transform_5(%arg0: i32) -> (i32, i32) {
    %c0_i32 = arith.constant 0 : i32
    %c0_i32_0 = arith.constant 0 : i32
    %c0_i32_1 = arith.constant 0 : i32
    return %c0_i32, %c0_i32_0 : i32, i32
  }
  func.func @transform_6(%arg0: i32) -> (i32, i32) {
    %c0_i32 = arith.constant 0 : i32
    %c0_i32_0 = arith.constant 0 : i32
    %c0_i32_1 = arith.constant 0 : i32
    return %c0_i32, %c0_i32_0 : i32, i32
  }
  func.func @transform_7(%arg0: i32) -> (i32, i32) {
    %c0_i32 = arith.constant 0 : i32
    %c0_i32_0 = arith.constant 0 : i32
    return %arg0, %c0_i32 : i32, i32
  }
}

</mosaic_0001>

<bundles_post_ra>
// kernel: tpu_custom_call.1
= control target key start
LH: loop header
LB: loop body
LE: loop exit
PB: predicated region body
PF: predicated region fallthrough
CT: control target
= control target key end

     0   :  { %12 = vsyncpa [#allocation3], 0  ;;  %s1018_s0 = inlined_call_operand.hbm [shape: bf16[8,128], index: 0, kind: input, shape index: {}]   ;;  %s1019_s1 = inlined_call_operand.hbm [shape: bf16[128,128], index: 1, kind: input, shape index: {}]   ;;  %s1020_s2 = inlined_call_operand.hbm [shape: f32[1,128], index: 2, kind: input, shape index: {}]   ;;  %s1021_s3 = inlined_call_operand.hbm [shape: bf16[128,128], index: 3, kind: input, shape index: {}]   ;;  %s1022_s4 = inlined_call_operand.hbm [shape: f32[1,128], index: 4, kind: input, shape index: {}]   ;;  %s1023_s5 = inlined_call_operand.hbm [shape: bf16[128,128], index: 5, kind: input, shape index: {}]   ;;  %s1024_s6 = inlined_call_operand.hbm [shape: f32[1,128], index: 6, kind: input, shape index: {}]   ;;  %s1025_s7 = inlined_call_operand.hbm [shape: f32[8,128], index: 7, kind: output, shape index: {}]  }
   0x1   :  { %13 = vsyncpa [#allocation6], 0 }
   0x2   :  { %14 = vsyncpa [#allocation9], 0 }
   0x3   :  { %15 = vsyncpa [#allocation12], 0 }
   0x4   :  { %16 = vsyncpa [#allocation4], 0  ;;  %s831_s24 = smov [#allocation5]   ;;  %s645_s28 = scalar_lea.hbm %s1019_s1, 1024 }
   0x5   :  { %s32_s25 = sshll.u32 %s831_s24, 4  ;;  %p646_p0 = scmp.ne.s32.totalorder %s1019_s1, %s645_s28  ;;  %s33_s25 = int_to_ptr.vmem [resolvable:$true] %s32_s25 }
   0x6   :  { %p649_p1 = scmp.lt.u32.totalorder %s645_s28, %s1019_s1 }
   0x8   :  { %p651_p2 = pnand %p649_p1, %p646_p0 }
   0xa   :  { %654 = shalt.err (!%p651_p2)
}
   0xb   :  { %s655_s10 = scalar_lea.vmem %s33_s25, 1024  ;;  %p660_p4 = scmp.lt.s32.totalorder %s33_s25, %s33_s25 }
   0xc   :  { %p656_p3 = scmp.ne.s32.totalorder %s33_s25, %s655_s10  ;;  %p661_p5 = scmp.lt.s32.totalorder %s655_s10, %s655_s10 }
   0xe   :  { %p662_p6 = por %p661_p5, %p660_p4 }
  0x10   :  { %p663_p7 = pnand %p662_p6, %p656_p3 }
  0x12   :  { %666 = shalt.err (!%p663_p7)
}
  0x13   :  { %s832_s11 = smov 64   ;;  %s833_s12 = smov 4  }
  0x14   :  { %38 = dma.hbm_to_vmem [thread:$0]  %s1019_s1, 1024, %s33_s25, [#allocation6], %s832_s11, %s832_s11, %s833_s12  }
  0x15   :  { %s834_s15 = smov [#allocation8]   ;;  %s835_s17 = smov [#allocation11]  }
  0x16   :  { %s54_s16 = sshll.u32 %s834_s15, 4  ;;  %s76_s18 = sshll.u32 %s835_s17, 4  ;;  %s55_s16 = int_to_ptr.vmem [resolvable:$true] %s54_s16  ;;  %s77_s18 = int_to_ptr.vmem [resolvable:$true] %s76_s18 }
  0x17   :  { %s667_s21 = scalar_lea.hbm %s1021_s3, 1024 }
  0x18   :  { %p668_p8 = scmp.ne.s32.totalorder %s1021_s3, %s667_s21  ;;  %p671_p9 = scmp.lt.u32.totalorder %s667_s21, %s1021_s3 }
  0x1a   :  { %p673_p10 = pnand %p671_p9, %p668_p8 }
  0x1c   :  { %676 = shalt.err (!%p673_p10)
}
  0x1d   :  { %s677_s1 = scalar_lea.vmem %s55_s16, 1024  ;;  %p682_p12 = scmp.lt.s32.totalorder %s55_s16, %s55_s16 }
  0x1e   :  { %p678_p11 = scmp.ne.s32.totalorder %s55_s16, %s677_s1  ;;  %p683_p13 = scmp.lt.s32.totalorder %s677_s1, %s677_s1 }
  0x20   :  { %p684_p0 = por %p683_p13, %p682_p12 }
  0x22   :  { %p685_p1 = pnand %p684_p0, %p678_p11 }
  0x24   :  { %688 = shalt.err (!%p685_p1)
}
  0x25   :  { %60 = dma.hbm_to_vmem [thread:$0]  %s1021_s3, 1024, %s55_s16, [#allocation9], %s832_s11, %s832_s11, %s833_s12  }
  0x26   :  { %s689_s30 = scalar_lea.hbm %s1023_s5, 1024 }
  0x27   :  { %p690_p2 = scmp.ne.s32.totalorder %s1023_s5, %s689_s30  ;;  %p693_p3 = scmp.lt.u32.totalorder %s689_s30, %s1023_s5 }
  0x29   :  { %p695_p4 = pnand %p693_p3, %p690_p2 }
  0x2b   :  { %698 = shalt.err (!%p695_p4)
}
  0x2c   :  { %s699_s14 = scalar_lea.vmem %s77_s18, 1024  ;;  %p704_p6 = scmp.lt.s32.totalorder %s77_s18, %s77_s18 }
  0x2d   :  { %p700_p5 = scmp.ne.s32.totalorder %s77_s18, %s699_s14  ;;  %p705_p7 = scmp.lt.s32.totalorder %s699_s14, %s699_s14 }
  0x2f   :  { %p706_p8 = por %p705_p7, %p704_p6 }
  0x31   :  { %p707_p9 = pnand %p706_p8, %p700_p5 }
  0x33   :  { %710 = shalt.err (!%p707_p9)
}
  0x34   :  { %82 = dma.hbm_to_vmem [thread:$0]  %s1023_s5, 1024, %s77_s18, [#allocation12], %s832_s11, %s832_s11, %s833_s12  }
  0x35   :  { %s836_s16 = smov [#allocation2]   ;;  %s837_s19 = smov [#allocation7]  }
  0x36   :  { %s23_s17 = sshll.u32 %s836_s16, 4  ;;  %s45_s20 = sshll.u32 %s837_s19, 4  ;;  %s24_s17 = int_to_ptr.vmem [resolvable:$true] %s23_s17  ;;  %s46_s20 = int_to_ptr.vmem [resolvable:$true] %s45_s20 }
  0x37   :  { %s711_s23 = scalar_lea.hbm %s1018_s0, 64 }
  0x38   :  { %p712_p10 = scmp.ne.s32.totalorder %s1018_s0, %s711_s23  ;;  %p715_p11 = scmp.lt.u32.totalorder %s711_s23, %s1018_s0 }
  0x3a   :  { %p717_p12 = pnand %p715_p11, %p712_p10 }
  0x3c   :  { %720 = shalt.err (!%p717_p12)
}
  0x3d   :  { %s721_s5 = scalar_lea.vmem %s24_s17, 64  ;;  %p726_p0 = scmp.lt.s32.totalorder %s24_s17, %s24_s17 }
  0x3e   :  { %p722_p13 = scmp.ne.s32.totalorder %s24_s17, %s721_s5  ;;  %p727_p1 = scmp.lt.s32.totalorder %s721_s5, %s721_s5 }
  0x40   :  { %p728_p2 = por %p727_p1, %p726_p0 }
  0x42   :  { %p729_p3 = pnand %p728_p2, %p722_p13 }
  0x44   :  { %732 = shalt.err (!%p729_p3)
}
  0x45   :  { %26 = dma.hbm_to_vmem [thread:$0]  %s1018_s0, 64, %s24_s17, [#allocation3]  }
  0x46   :  { %s733_s28 = scalar_lea.hbm %s1020_s2, 16 }
  0x47   :  { %p734_p4 = scmp.ne.s32.totalorder %s1020_s2, %s733_s28  ;;  %p737_p5 = scmp.lt.u32.totalorder %s733_s28, %s1020_s2 }
  0x49   :  { %p739_p6 = pnand %p737_p5, %p734_p4 }
  0x4b   :  { %742 = shalt.err (!%p739_p6)
}
  0x4c   :  { %s743_s10 = scalar_lea.vmem %s46_s20, 16  ;;  %s747_s13 = scalar_lea.vmem %s46_s20, 32 }
  0x4d   :  { %p744_p7 = scmp.ne.s32.totalorder %s46_s20, %s743_s10  ;;  %p748_p8 = scmp.lt.s32.totalorder %s46_s20, %s46_s20 }
  0x4e   :  { %p749_p9 = scmp.lt.s32.totalorder %s747_s13, %s743_s10 }
  0x50   :  { %p750_p10 = por %p749_p9, %p748_p8 }
  0x52   :  { %p751_p11 = pnand %p750_p10, %p744_p7 }
  0x54   :  { %754 = shalt.err (!%p751_p11)
}
  0x55   :  { %48 = dma.hbm_to_vmem [thread:$0]  %s1020_s2, 16, %s46_s20, [#allocation6]  }
  0x56   :  { %s838_s3 = smov [#allocation10]   ;;  %s839_s16 = smov [#allocation13]  }
  0x57   :  { %s67_s15 = sshll.u32 %s838_s3, 4  ;;  %s89_s17 = sshll.u32 %s839_s16, 4  ;;  %s68_s15 = int_to_ptr.vmem [resolvable:$true] %s67_s15  ;;  %s90_s17 = int_to_ptr.vmem [resolvable:$true] %s89_s17 }
  0x58   :  { %s755_s22 = scalar_lea.hbm %s1022_s4, 16 }
  0x59   :  { %p756_p12 = scmp.ne.s32.totalorder %s1022_s4, %s755_s22  ;;  %p759_p13 = scmp.lt.u32.totalorder %s755_s22, %s1022_s4 }
  0x5b   :  { %p761_p0 = pnand %p759_p13, %p756_p12 }
  0x5d   :  { %764 = shalt.err (!%p761_p0)
}
  0x5e   :  { %s765_s2 = scalar_lea.vmem %s68_s15, 16  ;;  %s769_s20 = scalar_lea.vmem %s68_s15, 32 }
  0x5f   :  { %p766_p1 = scmp.ne.s32.totalorder %s68_s15, %s765_s2  ;;  %p770_p2 = scmp.lt.s32.totalorder %s68_s15, %s68_s15 }
  0x60   :  { %p771_p3 = scmp.lt.s32.totalorder %s769_s20, %s765_s2 }
  0x62   :  { %p772_p4 = por %p771_p3, %p770_p2 }
  0x64   :  { %p773_p5 = pnand %p772_p4, %p766_p1 }
  0x66   :  { %776 = shalt.err (!%p773_p5)
}
  0x67   :  { %70 = dma.hbm_to_vmem [thread:$0]  %s1022_s4, 16, %s68_s15, [#allocation9]  }
  0x68   :  { %s777_s18 = scalar_lea.hbm %s1024_s6, 16 }
  0x69   :  { %p778_p6 = scmp.ne.s32.totalorder %s1024_s6, %s777_s18  ;;  %p781_p7 = scmp.lt.u32.totalorder %s777_s18, %s1024_s6 }
  0x6b   :  { %p783_p8 = pnand %p781_p7, %p778_p6 }
  0x6d   :  { %786 = shalt.err (!%p783_p8)
}
  0x6e   :  { %s787_s8 = scalar_lea.vmem %s90_s17, 16  ;;  %s791_s9 = scalar_lea.vmem %s90_s17, 32 }
  0x6f   :  { %p788_p9 = scmp.ne.s32.totalorder %s90_s17, %s787_s8  ;;  %p792_p10 = scmp.lt.s32.totalorder %s90_s17, %s90_s17 }
  0x70   :  { %p793_p11 = scmp.lt.s32.totalorder %s791_s9, %s787_s8 }
  0x72   :  { %p794_p12 = por %p793_p11, %p792_p10 }
  0x74   :  { %p795_p13 = pnand %p794_p12, %p788_p9 }
  0x76   :  { %798 = shalt.err (!%p795_p13)
}
  0x77   :  { %92 = dma.hbm_to_vmem [thread:$0]  %s1024_s6, 16, %s90_s17, [#allocation12]  }
  0x78   :  { %821 = dma.done.wait [#allocation3], 64  }
  0x79   :  { %822 = vsyncadd [#allocation3], 4294967232 }
  0x7a   :  { %823 = dma.done.wait [#allocation6], 1040  }
  0x7b   :  { %824 = vsyncadd [#allocation6], 4294966256 }
  0x7c   :  { %825 = dma.done.wait [#allocation9], 1040  }
  0x7d   :  { %826 = vsyncadd [#allocation9], 4294966256 }
  0x7e   :  { %827 = dma.done.wait [#allocation12], 1040  }
  0x7f   :  { %828 = vsyncadd [#allocation12], 4294966256  ;;  %v840_v0 = vmov 0.0   ;;  %vm841_vm0 = vmmov 0   ;;  %v613_v1 = vld [vmem:[#allocation5] sm:$0xff]   ;;  %v614_v2 = vld [vmem:[#allocation5 + $0x8] sm:$0xff]  }
  0x80   :  { %541 = vmatprep.subr.bf16.mxu0 %v840_v0  ;;  %557 = vmatprep.mubr.msk.bf16.mxu0 %vm841_vm0, %v840_v0  ;;  %v615_v3 = vld [vmem:[#allocation5 + $0x10] sm:$0xff]   ;;  %v621_v4 = vld [vmem:[#allocation8] sm:$0xff]   ;;  %v616_v5 = vld [vmem:[#allocation5 + $0x18] sm:$0xff]   ;;  %s842_s6 = smov [#allocation14]  }
  0x81   :  { %561 = vmatprep.subr.bf16.mxu1 %v840_v0  ;;  %577 = vmatprep.mubr.msk.bf16.mxu1 %vm841_vm0, %v840_v0  ;;  %v622_v6 = vld [vmem:[#allocation8 + $0x8] sm:$0xff]   ;;  %v617_v7 = vld [vmem:[#allocation5 + $0x20] sm:$0xff]   ;;  %v623_v8 = vld [vmem:[#allocation8 + $0x10] sm:$0xff]   ;;  %s475_s13 = sshll.u32 %s842_s6, 4  ;;  %s476_s13 = int_to_ptr.vmem [resolvable:$true] %s475_s13 }
  0x82   :  { %542 = vmatpush3.bf16.msra.mxu0 %v613_v1  ;;  %562 = vmatpush3.bf16.msra.mxu1 %v621_v4  ;;  %v618_v9 = vld [vmem:[#allocation5 + $0x28] sm:$0xff]   ;;  %v624_v10 = vld [vmem:[#allocation8 + $0x18] sm:$0xff]   ;;  %v619_v11 = vld [vmem:[#allocation5 + $0x30] sm:$0xff]   ;;  %s799_s0 = scalar_lea.vmem %s476_s13, 128  ;;  %p804_p1 = scmp.lt.s32.totalorder %s476_s13, %s476_s13 }
  0x83   :  { %543 = vmatprep.subr.bf16.mxu0 %v840_v0  ;;  %563 = vmatprep.subr.bf16.mxu1 %v840_v0  ;;  %v620_v12 = vld [vmem:[#allocation5 + $0x38] sm:$0xff]   ;;  %v625_v14 = vld [vmem:[#allocation8 + $0x20] sm:$0xff]   ;;  %v626_v15 = vld [vmem:[#allocation8 + $0x28] sm:$0xff]   ;;  %p800_p0 = scmp.ne.s32.totalorder %s476_s13, %s799_s0  ;;  %p805_p2 = scmp.lt.s32.totalorder %s799_s0, %s799_s0 }
  0x84   :  { %v115_v13 = vld [vmem:[#allocation2] sm:$0xf]  ;;  %v627_v16 = vld [vmem:[#allocation8 + $0x30] sm:$0xff]   ;;  %v629_v18 = vld [vmem:[#allocation11] sm:$0xff]  }
  0x85   :  { %v628_v17 = vld [vmem:[#allocation8 + $0x38] sm:$0xff]   ;;  %v630_v19 = vld [vmem:[#allocation11 + $0x8] sm:$0xff]   ;;  %v633_v30 = vld [vmem:[#allocation11 + $0x20] sm:$0xff]   ;;  %p806_p3 = por %p805_p2, %p804_p1 }
  0x86   :  { %544 = vmatpush3.bf16.msra.mxu0 %v614_v2  ;;  %564 = vmatpush3.bf16.msra.mxu1 %v622_v6  ;;  %v631_v20 = vld [vmem:[#allocation11 + $0x10] sm:$0xff]   ;;  %v632_v21 = vld [vmem:[#allocation11 + $0x18] sm:$0xff]   ;;  %v634_v31 = vld [vmem:[#allocation11 + $0x28] sm:$0xff]  }
  0x87   :  { %545 = vmatprep.subr.bf16.mxu0 %v840_v0  ;;  %565 = vmatprep.subr.bf16.mxu1 %v840_v0  ;;  %v487_v22 = vld [vmem:[#allocation7] ss:$0 sm:$0xff]  ;;  %v635_v32 = vld [vmem:[#allocation11 + $0x30] sm:$0xff]   ;;  %v496_v34 = vld [vmem:[#allocation10] ss:$0 sm:$0xff]  ;;  %p807_p4 = pnand %p806_p3, %p800_p0 }
  0x88   :  { %v636_v33 = vld [vmem:[#allocation11 + $0x38] sm:$0xff]   ;;  %v505_v42 = vld [vmem:[#allocation13] ss:$0 sm:$0xff] }
  0x8a   :  { %546 = vmatpush3.bf16.msra.mxu0 %v615_v3  ;;  %566 = vmatpush3.bf16.msra.mxu1 %v623_v8 }
  0x8b   :  { %547 = vmatprep.subr.bf16.mxu0 %v840_v0  ;;  %567 = vmatprep.subr.bf16.mxu1 %v840_v0 }
  0x8e   :  { %548 = vmatpush3.bf16.msra.mxu0 %v616_v5  ;;  %568 = vmatpush3.bf16.msra.mxu1 %v624_v10 }
  0x8f   :  { %549 = vmatprep.subr.bf16.mxu0 %v840_v0  ;;  %569 = vmatprep.subr.bf16.mxu1 %v840_v0 }
  0x92   :  { %550 = vmatpush3.bf16.msra.mxu0 %v617_v7  ;;  %570 = vmatpush3.bf16.msra.mxu1 %v625_v14 }
  0x93   :  { %551 = vmatprep.subr.bf16.mxu0 %v840_v0  ;;  %571 = vmatprep.subr.bf16.mxu1 %v840_v0 }
  0x96   :  { %552 = vmatpush3.bf16.msra.mxu0 %v618_v9  ;;  %572 = vmatpush3.bf16.msra.mxu1 %v626_v15 }
  0x97   :  { %553 = vmatprep.subr.bf16.mxu0 %v840_v0  ;;  %573 = vmatprep.subr.bf16.mxu1 %v840_v0 }
  0x9a   :  { %554 = vmatpush3.bf16.msra.mxu0 %v619_v11  ;;  %574 = vmatpush3.bf16.msra.mxu1 %v627_v16 }
  0x9b   :  { %555 = vmatprep.subr.bf16.mxu0 %v840_v0  ;;  %575 = vmatprep.subr.bf16.mxu1 %v840_v0 }
  0x9e   :  { %556 = vmatpush3.bf16.msra.mxu0 %v620_v12  ;;  %576 = vmatpush3.bf16.msra.mxu1 %v628_v17 }
  0x9f   :  { %581 = vmatprep.subr.bf16.mxu0 %v840_v0 }
  0xa1   :  { %558 = vmatmul.mubr.bf16.vlgmr.msra.gmra.mrb[0].mxu0 %v115_v13 }
  0xa2   :  { %597 = vmatprep.mubr.msk.bf16.mxu0 %vm841_vm0, %v840_v0  ;;  %582 = vmatpush3.bf16.msra.mxu0 %v629_v18 }
  0xa3   :  { %583 = vmatprep.subr.bf16.mxu0 %v840_v0 }
  0xa6   :  { %584 = vmatpush3.bf16.msra.mxu0 %v630_v19 }
  0xa7   :  { %585 = vmatprep.subr.bf16.mxu0 %v840_v0 }
  0xaa   :  { %586 = vmatpush3.bf16.msra.mxu0 %v631_v20 }
  0xab   :  { %587 = vmatprep.subr.bf16.mxu0 %v840_v0 }
  0xae   :  { %588 = vmatpush3.bf16.msra.mxu0 %v632_v21 }
  0xaf   :  { %589 = vmatprep.subr.bf16.mxu0 %v840_v0 }
  0xb2   :  { %590 = vmatpush3.bf16.msra.mxu0 %v633_v30 }
  0xb3   :  { %591 = vmatprep.subr.bf16.mxu0 %v840_v0 }
  0xb6   :  { %592 = vmatpush3.bf16.msra.mxu0 %v634_v31 }
  0xb7   :  { %593 = vmatprep.subr.bf16.mxu0 %v840_v0 }
  0xba   :  { %594 = vmatpush3.bf16.msra.mxu0 %v635_v32 }
  0xbb   :  { %595 = vmatprep.subr.bf16.mxu0 %v840_v0 }
  0xbe   :  { %596 = vmatpush3.bf16.msra.mxu0 %v636_v33 }
 0x174   :  { %v221_v23 = vpop.f32.mrb[0].mxu0 }
 0x175   :  { %v222_v24 = vadd.f32 %v487_v22, %v221_v23  ;;  %v559_v25 = vpop.f32.mrb[1].mxu0 }
 0x176   :  { %v224_v26 = vpop.f32.mrb[2].mxu0 }
 0x177   :  { %637 = vtanh.f32 %v222_v24  ;;  %v560_v27 = vpop.f32.mrb[3].mxu0 }
 0x181   :  { %v638_v28 = vpop.eup %637 }
 0x182   :  { %v228_v29 = vpack.c.bf16 %v638_v28, %v638_v28 }
 0x184   :  { %578 = vmatmul.mubr.bf16.vlgmr.msra.gmra.mrb[0].mxu1 %v228_v29 }
 0x257   :  { %v334_v35 = vpop.f32.mrb[0].mxu1 }
 0x258   :  { %v335_v36 = vadd.f32 %v496_v34, %v334_v35  ;;  %v579_v37 = vpop.f32.mrb[1].mxu1 }
 0x259   :  { %v337_v38 = vpop.f32.mrb[2].mxu1 }
 0x25a   :  { %639 = vtanh.f32 %v335_v36  ;;  %v580_v39 = vpop.f32.mrb[3].mxu1 }
 0x264   :  { %v640_v40 = vpop.eup %639 }
 0x265   :  { %v341_v41 = vpack.c.bf16 %v640_v40, %v640_v40 }
 0x267   :  { %598 = vmatmul.mubr.bf16.vlgmr.msra.gmra.mrb[4].mxu0 %v341_v41 }
 0x33a   :  { %v447_v43 = vpop.f32.mrb[4].mxu0 }
 0x33b   :  { %v448_v44 = vadd.f32 %v505_v42, %v447_v43  ;;  %v599_v45 = vpop.f32.mrb[5].mxu0 }
 0x33c   :  { %v450_v46 = vpop.f32.mrb[6].mxu0 }
 0x33d   :  { %v454_v47 = vand.u32 2147483647, %v448_v44  ;;  %v600_v48 = vpop.f32.mrb[7].mxu0  ;;  %v453_v59 = vmax.f32 %v448_v44, 0.0 }
 0x33f   :  { %v455_v49 = vsub.f32 0.0, %v454_v47 }
 0x341   :  { %v456_v50 = vmul.f32 1.442695, %v455_v49 }
 0x343   :  { %641 = vpow2.f32 %v456_v50 }
 0x34d   :  { %v642_v51 = vpop.eup %641 }
 0x34e   :  { %v458_v52 = vadd.f32 1.0, %v642_v51  ;;  %v461_v53 = vmul.f32 -0.5, %v642_v51  ;;  %v464_v55 = vand.u32 2147483647, %v642_v51 }
 0x350   :  { %643 = vlog2.f32 %v458_v52  ;;  %v462_v54 = vadd.f32 1.0, %v461_v53  ;;  %vm465_vm1 = vcmp.lt.f32.partialorder %v464_v55, 0.0004427343 }
 0x352   :  { %v463_v58 = vmul.f32 %v642_v51, %v462_v54 }
 0x35a   :  { %v644_v56 = vpop.eup %643 }
 0x35b   :  { %v460_v57 = vmul.f32 0.6931472, %v644_v56 }
 0x35d   :  { %v466_v60 = vsel %vm465_vm1, %v463_v58, %v460_v57 }
 0x35e   :  { %v467_v61 = vadd.f32 %v466_v60, %v453_v59 }
 0x360   :  { %468 = vst [vmem:[#allocation14] sm:$0xff] %v467_v61 }
 0x361   :  { %810 = shalt.err (!%p807_p4)
}
 0x362   :  { %s811_s15 = scalar_lea.hbm %s1025_s7, 128 }
 0x363   :  { %p812_p5 = scmp.ne.s32.totalorder %s1025_s7, %s811_s15  ;;  %p815_p6 = scmp.lt.u32.totalorder %s811_s15, %s1025_s7 }
 0x365   :  { %p817_p7 = pnand %p815_p6, %p812_p5 }
 0x367   :  { %820 = shalt.err (!%p817_p7)
}
 0x368   :  { %478 = dma.vmem_to_hbm [thread:$0]  %s476_s13, 128, %s1025_s7, [#allocation4]  }
 0x369   :  { %829 = dma.done.wait [#allocation4], 128  }
 0x36a   :  { %830 = vsyncadd [#allocation4], 4294967168 }
 0x36b   :  { %482 = vsyncpa [#allocation3], 1 }
 0x36c   :  { %483 = vsyncpa [#allocation6], 1 }
 0x36d   :  { %484 = vsyncpa [#allocation9], 1 }
 0x36e   :  { %485 = vsyncpa [#allocation12], 1 }
 0x36f   :  { %486 = vsyncpa [#allocation4], 1 }

</bundles_post_ra>
